<compile_context>
chip_gen: v6e
topology: v6e:2x2x1
jax: 0.10.0
libtpu: 0.0.40
codegen_flags: <defaults>
</compile_context>

<pallas_src>
import functools
import math

import jax
import jax.numpy as jnp
from jax.experimental import pallas as pl
from jax.experimental.pallas import tpu as pltpu


def _causal_attn_kernel(x_ref, wqkv_ref, bqkv_ref, wp_ref, bp_ref, o_ref,
                        qkv_ref, y_ref, *, n_head: int, approx_recip: bool):
    blk_b, T, C = x_ref.shape
    D = C // n_head
    M = blk_b * T
    mdt = x_ref.dtype                       # matmul input dtype (f32 or bf16)

    x2 = x_ref[...].reshape(M, C)           # layout-free: wrapper pads T to sublane pack

    # (1) Fused QKV projection: single (M,C)@(C,3C) dot; 1/sqrt(D) already folded
    #     into the Q columns by the wrapper. Result kept in f32 VMEM scratch.
    qkv_ref[...] = (jnp.dot(x2, wqkv_ref[...], preferred_element_type=jnp.float32)
                    + bqkv_ref[...])

    # Additive causal mask (finite fill -> no inf-inf NaN hazard), built and
    # broadcast once per grid step.
    row = jax.lax.broadcasted_iota(jnp.int32, (T, T), 0)
    col = jax.lax.broadcasted_iota(jnp.int32, (T, T), 1)
    neg = jnp.where(row >= col, 0.0, -1e30).astype(jnp.float32)     # (T, T)
    neg_b = jnp.broadcast_to(neg, (blk_b, T, T))

    # Static head loop -> static lane offsets (cheap slices). Per-head temps die
    # at the y_ref store; the "concat heads" accumulator lives in VMEM scratch,
    # not in carried vregs.
    for h in range(n_head):
        q = qkv_ref[:, h * D:(h + 1) * D].reshape(blk_b, T, D).astype(mdt)
        k = qkv_ref[:, C + h * D:C + (h + 1) * D].reshape(blk_b, T, D).astype(mdt)
        v = qkv_ref[:, 2 * C + h * D:2 * C + (h + 1) * D].reshape(blk_b, T, D).astype(mdt)

        # Scores + additive causal mask, stable softmax statistics (all f32).
        s = jnp.einsum("btd,bsd->bts", q, k,
                       preferred_element_type=jnp.float32) + neg_b
        m = jnp.max(s, axis=-1, keepdims=True)
        p = jnp.exp(s - m)                               # unnormalized probs
        l = jnp.sum(p, axis=-1, keepdims=True)

        y = jnp.einsum("bts,bsd->btd", p.astype(mdt), v,
                       preferred_element_type=jnp.float32)          # (blk_b, T, D)
        # (3) Deferred normalization: scale the (T,D) output, not the (T,T) probs.
        y = y * pl.reciprocal(l, approx=approx_recip)

        # (2) Write this head's output at its lane offset -> concat is free.
        y_ref[:, h * D:(h + 1) * D] = y.reshape(M, D)

    # (2) Fused output projection: one full-K (M,C)@(C,C) dot + bias.
    out = jnp.dot(y_ref[...].astype(mdt), wp_ref[...],
                  preferred_element_type=jnp.float32) + bp_ref[...]
    o_ref[...] = out.reshape(blk_b, T, C).astype(o_ref.dtype)


def causal_self_attention(x, w_qkv, b_qkv, w_proj, b_proj, *, n_head,
                          block_b=None, vmem_limit_bytes=None):
    """x: (B, T, C); w_qkv: (C, 3C); b_qkv: (3C,); w_proj: (C, C); b_proj: (C,).

    Matmul inputs run in x.dtype (pass bf16 for MXU peak); accumulation, biases
    and softmax stay f32.
    """
    B, T, C = x.shape
    assert C % n_head == 0
    H = n_head
    D = C // H
    dt = x.dtype
    itemsize = jnp.dtype(dt).itemsize

    # ---- chip-aware VMEM budget --------------------------------------------
    try:
        vmem_cap = int(pltpu.get_tpu_info().vmem_capacity_bytes)
    except Exception:
        vmem_cap = 128 * 1024 * 1024
    small_vmem = vmem_cap <= 64 * 1024 * 1024          # v7x-class: 64 MiB / TC, 2 TCs
    if vmem_limit_bytes is None:
        # ~51 MiB on v7x, ~102 MiB on v5e/v6e.
        vmem_limit_bytes = int(min(vmem_cap * 0.8, vmem_cap - 8 * 1024 * 1024))

    # ---- pad T to the sublane pack so (B*T, C) merges are layout-free -------
    pack = 32 // itemsize                              # 8 for f32, 16 for bf16
    T_pad = ((T + pack - 1) // pack) * pack
    x_p = x if T_pad == T else jnp.pad(x, ((0, 0), (0, T_pad - T), (0, 0)))

    # ---- weight prep: fold 1/sqrt(D) into the Q columns, keep biases f32 ----
    scale = 1.0 / math.sqrt(D)
    col_scale = jnp.concatenate([jnp.full((C,), scale, jnp.float32),
                                 jnp.ones((2 * C,), jnp.float32)])
    w_qkv_s = (w_qkv.astype(jnp.float32) * col_scale[None, :]).astype(dt)   # (C, 3C)
    b_qkv_s = (b_qkv.astype(jnp.float32) * col_scale).reshape(1, 3 * C)     # f32
    w_proj_c = w_proj.astype(dt)                                            # (C, C)
    b_proj_c = b_proj.astype(jnp.float32).reshape(1, C)                     # f32

    # ---- block_b: batch rows into the matmul M dimension --------------------
    if block_b is None:
        rows_target = 256 if small_vmem else 512
        block_b = min(B, max(1, rows_target // max(T_pad, 1)))
        while B % block_b:
            block_b -= 1
        # Only on 2-TC (v7x-class) chips: keep >= 2 grid steps so both cores work.
        if small_vmem and B // block_b == 1 and block_b > 1:
            for cand in range(block_b // 2, 0, -1):
                if B % cand == 0:
                    block_b = cand
                    break

        def vmem_estimate(bb):
            m = bb * T_pad
            xo = 4 * bb * T_pad * C * itemsize                 # x + out, double-buffered
            w = 4 * C * C * itemsize + 4 * C * 4               # resident weights + biases
            scr = m * 3 * C * 4 + m * C * 4                    # qkv + y scratch (f32)
            tmp = (3 * bb * T_pad * T_pad * 4                  # s / p / mask
                   + 3 * m * D * (4 + itemsize) + m * D * 4)   # q/k/v + y_h temps
            return xo + w + scr + tmp

        # Shrink block_b first when over budget.
        while block_b > 1 and vmem_estimate(block_b) > int(0.7 * vmem_limit_bytes):
            nb = block_b - 1
            while B % nb:
                nb -= 1
            block_b = nb
    assert B % block_b == 0
    num_blk = B // block_b
    M = block_b * T_pad

    kernel = functools.partial(_causal_attn_kernel, n_head=n_head,
                               approx_recip=bool(dt != jnp.float32))

    out = pl.pallas_call(
        kernel,
        out_shape=jax.ShapeDtypeStruct((B, T_pad, C), dt),
        grid_spec=pltpu.PrefetchScalarGridSpec(
            num_scalar_prefetch=0,
            grid=(num_blk,),
            in_specs=[
                pl.BlockSpec((block_b, T_pad, C), lambda i: (i, 0, 0)),    # x (pipelined)
                pl.BlockSpec(memory_space=pltpu.MemorySpace.VMEM),         # w_qkv (resident)
                pl.BlockSpec(memory_space=pltpu.MemorySpace.VMEM),         # b_qkv (resident)
                pl.BlockSpec(memory_space=pltpu.MemorySpace.VMEM),         # w_proj (resident)
                pl.BlockSpec(memory_space=pltpu.MemorySpace.VMEM),         # b_proj (resident)
            ],
            out_specs=pl.BlockSpec((block_b, T_pad, C), lambda i: (i, 0, 0)),
            scratch_shapes=[
                pltpu.VMEM((M, 3 * C), jnp.float32),   # fused QKV result
                pltpu.VMEM((M, C), jnp.float32),       # concatenated head outputs
            ],
        ),
        compiler_params=pltpu.CompilerParams(
            dimension_semantics=("parallel",),
            vmem_limit_bytes=vmem_limit_bytes,
        ),
    )(x_p, w_qkv_s, b_qkv_s, w_proj_c, b_proj_c)

    return out[:, :T, :] if T_pad != T else out


def _reference(x, w_qkv, b_qkv, w_proj, b_proj, n_head):
    """Pure-JAX reference mirroring the PyTorch forward."""
    B, T, C = x.shape
    D = C // n_head
    qkv = x @ w_qkv + b_qkv
    q, k, v = jnp.split(qkv, 3, axis=-1)
    q = q.reshape(B, T, n_head, D).transpose(0, 2, 1, 3)
    k = k.reshape(B, T, n_head, D).transpose(0, 2, 1, 3)
    v = v.reshape(B, T, n_head, D).transpose(0, 2, 1, 3)
    s = jnp.einsum("bhtd,bhsd->bhts", q, k) / math.sqrt(D)
    mask = jnp.tril(jnp.ones((T, T), dtype=bool))
    s = jnp.where(mask[None, None], s, -jnp.inf)
    p = jax.nn.softmax(s, axis=-1)
    y = jnp.einsum("bhts,bhsd->bhtd", p, v)
    y = y.transpose(0, 2, 1, 3).reshape(B, T, C)
    return y @ w_proj + b_proj


if __name__ == "__main__":
    # Small config consistent with the module: n_embd=32, n_head=4, block_size=T=8.
    B, T, C, n_head = 2, 8, 32, 4

    key = jax.random.PRNGKey(0)
    kx, kw1, kb1, kw2, kb2 = jax.random.split(key, 5)

    x = jax.random.normal(kx, (B, T, C), dtype=jnp.float32)
    w_qkv = jax.random.normal(kw1, (C, 3 * C), dtype=jnp.float32) * (1.0 / math.sqrt(C))
    b_qkv = jax.random.normal(kb1, (3 * C,), dtype=jnp.float32) * 0.02
    w_proj = jax.random.normal(kw2, (C, C), dtype=jnp.float32) * (1.0 / math.sqrt(C))
    b_proj = jax.random.normal(kb2, (C,), dtype=jnp.float32) * 0.02

    ref = _reference(x, w_qkv, b_qkv, w_proj, b_proj, n_head)

    # f32 matmul-input path (exact reciprocal -> tight tolerance is fine).
    out = causal_self_attention(x, w_qkv, b_qkv, w_proj, b_proj, n_head=n_head)
    out = jax.block_until_ready(out)
    assert out.shape == (B, T, C)
    assert jnp.allclose(out, ref, atol=1e-2, rtol=1e-2), "f32 mismatch vs reference"

    # bf16 matmul-input path (exercises the T->16 sublane-pack padding as well).
    out_bf16 = causal_self_attention(
        x.astype(jnp.bfloat16), w_qkv.astype(jnp.bfloat16), b_qkv,
        w_proj.astype(jnp.bfloat16), b_proj, n_head=n_head)
    out_bf16 = jax.block_until_ready(out_bf16)
    assert out_bf16.shape == (B, T, C)
    assert jnp.allclose(out_bf16.astype(jnp.float32), ref, atol=0.3, rtol=0.1), \
        "bf16 mismatch vs reference"

    print("KERNEL_OK")
</pallas_src>

<mosaic_0001>
module attributes {stable_mosaic.version = 11 : i64} {
  func.func @_causal_attn_kernel(%arg0: i32, %arg1: memref<2x8x32xf32, #tpu.memory_space<vmem>>, %arg2: memref<32x96xf32, #tpu.memory_space<vmem>>, %arg3: memref<1x96xf32, #tpu.memory_space<vmem>>, %arg4: memref<32x32xf32, #tpu.memory_space<vmem>>, %arg5: memref<1x32xf32, #tpu.memory_space<vmem>>, %arg6: memref<2x8x32xf32, #tpu.memory_space<vmem>>, %arg7: memref<16x96xf32, #tpu.memory_space<vmem>>, %arg8: memref<16x32xf32, #tpu.memory_space<vmem>>) attributes {dimension_semantics = [#tpu.dimension_semantics<parallel>], iteration_bounds = array<i64: 1>, scalar_prefetch = 0 : i64, scratch_operands = 2 : i64, tpu.core_type = #tpu.core_type<tc>, window_params = [{transform_indices = @transform_0, window_bounds = array<i64: 2, 8, 32>}, {pipeline_mode = #tpu.pipeline_mode<synchronous>, transform_indices = @transform_1, window_bounds = array<i64: 32, 96>}, {pipeline_mode = #tpu.pipeline_mode<synchronous>, transform_indices = @transform_2, window_bounds = array<i64: 1, 96>}, {pipeline_mode = #tpu.pipeline_mode<synchronous>, transform_indices = @transform_3, window_bounds = array<i64: 32, 32>}, {pipeline_mode = #tpu.pipeline_mode<synchronous>, transform_indices = @transform_4, window_bounds = array<i64: 1, 32>}, {transform_indices = @transform_5, window_bounds = array<i64: 2, 8, 32>}]} {
    %c0 = arith.constant 0 : index
    %c0_0 = arith.constant 0 : index
    %c0_1 = arith.constant 0 : index
    %0 = vector.load %arg1[%c0, %c0_0, %c0_1] : memref<2x8x32xf32, #tpu.memory_space<vmem>>, vector<2x8x32xf32>
    %1 = vector.shape_cast %0 : vector<2x8x32xf32> to vector<16x32xf32>
    %c0_2 = arith.constant 0 : index
    %c0_3 = arith.constant 0 : index
    %2 = vector.load %arg2[%c0_2, %c0_3] : memref<32x96xf32, #tpu.memory_space<vmem>>, vector<32x96xf32>
    %cst = arith.constant dense<0.000000e+00> : vector<16x96xf32>
    %3 = tpu.matmul %1, %2, %cst {dimension_numbers = #tpu.dot_dimension_numbers<[1], [0], [0], [1], [0, 0, 1, 1], [], []>} : vector<16x32xf32>, vector<32x96xf32>, vector<16x96xf32> -> vector<16x96xf32>
    %c0_4 = arith.constant 0 : index
    %c0_5 = arith.constant 0 : index
    %4 = vector.load %arg3[%c0_4, %c0_5] : memref<1x96xf32, #tpu.memory_space<vmem>>, vector<1x96xf32>
    %5 = vector.broadcast %4 : vector<1x96xf32> to vector<16x96xf32>
    %6 = arith.addf %3, %5 : vector<16x96xf32>
    %c0_6 = arith.constant 0 : index
    %c0_7 = arith.constant 0 : index
    %7 = vector.load %arg7[%c0_6, %c0_7] : memref<16x96xf32, #tpu.memory_space<vmem>>, vector<16x96xf32>
    tpu.vector_store %arg7[%c0_6, %c0_7], %6 {strides = array<i32>} : memref<16x96xf32, #tpu.memory_space<vmem>>, vector<16x96xf32>,
    %8 = tpu.iota {dimensions = array<i32: 0>} : vector<8x8xi32>
    %9 = tpu.iota {dimensions = array<i32: 1>} : vector<8x8xi32>
    %10 = arith.cmpi sge, %8, %9 : vector<8x8xi32>
    %cst_8 = arith.constant 0.000000e+00 : f32
    %cst_9 = arith.constant -1.000000e+30 : f32
    %11 = vector.broadcast %cst_8 : f32 to vector<8x8xf32>
    %12 = vector.broadcast %cst_9 : f32 to vector<8x8xf32>
    %13 = arith.select %10, %11, %12 : vector<8x8xi1>, vector<8x8xf32>
    %14 = vector.shape_cast %13 : vector<8x8xf32> to vector<1x8x8xf32>
    %15 = vector.broadcast %14 : vector<1x8x8xf32> to vector<2x8x8xf32>
    %c0_10 = arith.constant 0 : index
    %c0_11 = arith.constant 0 : index
    %16 = vector.load %arg7[%c0_10, %c0_11] : memref<16x96xf32, #tpu.memory_space<vmem>>, vector<16x8xf32>
    %17 = vector.shape_cast %16 : vector<16x8xf32> to vector<2x8x8xf32>
    %c0_12 = arith.constant 0 : index
    %c32 = arith.constant 32 : index
    %18 = vector.load %arg7[%c0_12, %c32] : memref<16x96xf32, #tpu.memory_space<vmem>>, vector<16x8xf32>
    %19 = vector.shape_cast %18 : vector<16x8xf32> to vector<2x8x8xf32>
    %c0_13 = arith.constant 0 : index
    %c64 = arith.constant 64 : index
    %20 = vector.load %arg7[%c0_13, %c64] : memref<16x96xf32, #tpu.memory_space<vmem>>, vector<16x8xf32>
    %21 = vector.shape_cast %20 : vector<16x8xf32> to vector<2x8x8xf32>
    "tpu.trace_start"() <{level = 10 : i32, message = "btd,bsd->bts"}> : () -> ()
    %cst_14 = arith.constant dense<0.000000e+00> : vector<2x8x8xf32>
    %22 = tpu.matmul %17, %19, %cst_14 {dimension_numbers = #tpu.dot_dimension_numbers<[2], [2], [1], [1], [0, 0, 0, 1, 1, 1], [0], [0]>} : vector<2x8x8xf32>, vector<2x8x8xf32>, vector<2x8x8xf32> -> vector<2x8x8xf32>
    "tpu.trace_stop"() : () -> ()
    %23 = arith.addf %22, %15 : vector<2x8x8xf32>
    %cst_15 = arith.constant dense<0xFF800000> : vector<2x8xf32>
    %24 = vector.multi_reduction <maximumf>, %23, %cst_15 [2] : vector<2x8x8xf32> to vector<2x8xf32>
    %25 = vector.shape_cast %24 : vector<2x8xf32> to vector<2x8x1xf32>
    %26 = vector.broadcast %25 : vector<2x8x1xf32> to vector<2x8x8xf32>
    %27 = arith.subf %23, %26 : vector<2x8x8xf32>
    %28 = math.exp %27 : vector<2x8x8xf32>
    %cst_16 = arith.constant dense<0.000000e+00> : vector<2x8xf32>
    %29 = vector.multi_reduction <add>, %28, %cst_16 [2] : vector<2x8x8xf32> to vector<2x8xf32>
    %30 = vector.shape_cast %29 : vector<2x8xf32> to vector<2x8x1xf32>
    "tpu.trace_start"() <{level = 10 : i32, message = "bts,bsd->btd"}> : () -> ()
    %cst_17 = arith.constant dense<0.000000e+00> : vector<2x8x8xf32>
    %31 = tpu.matmul %28, %21, %cst_17 {dimension_numbers = #tpu.dot_dimension_numbers<[2], [1], [1], [2], [0, 0, 0, 1, 1, 2], [0], [0]>} : vector<2x8x8xf32>, vector<2x8x8xf32>, vector<2x8x8xf32> -> vector<2x8x8xf32>
    "tpu.trace_stop"() : () -> ()
    %32 = tpu.reciprocal %30 : vector<2x8x1xf32> -> vector<2x8x1xf32>
    %33 = vector.broadcast %32 : vector<2x8x1xf32> to vector<2x8x8xf32>
    %34 = arith.mulf %31, %33 : vector<2x8x8xf32>
    %35 = vector.shape_cast %34 : vector<2x8x8xf32> to vector<16x8xf32>
    %c0_18 = arith.constant 0 : index
    %c0_19 = arith.constant 0 : index
    %36 = vector.load %arg8[%c0_18, %c0_19] : memref<16x32xf32, #tpu.memory_space<vmem>>, vector<16x8xf32>
    tpu.vector_store %arg8[%c0_18, %c0_19], %35 {strides = array<i32>} : memref<16x32xf32, #tpu.memory_space<vmem>>, vector<16x8xf32>,
    %c0_20 = arith.constant 0 : index
    %c8 = arith.constant 8 : index
    %37 = vector.load %arg7[%c0_20, %c8] : memref<16x96xf32, #tpu.memory_space<vmem>>, vector<16x8xf32>
    %38 = vector.shape_cast %37 : vector<16x8xf32> to vector<2x8x8xf32>
    %c0_21 = arith.constant 0 : index
    %c40 = arith.constant 40 : index
    %39 = vector.load %arg7[%c0_21, %c40] : memref<16x96xf32, #tpu.memory_space<vmem>>, vector<16x8xf32>
    %40 = vector.shape_cast %39 : vector<16x8xf32> to vector<2x8x8xf32>
    %c0_22 = arith.constant 0 : index
    %c72 = arith.constant 72 : index
    %41 = vector.load %arg7[%c0_22, %c72] : memref<16x96xf32, #tpu.memory_space<vmem>>, vector<16x8xf32>
    %42 = vector.shape_cast %41 : vector<16x8xf32> to vector<2x8x8xf32>
    "tpu.trace_start"() <{level = 10 : i32, message = "btd,bsd->bts"}> : () -> ()
    %cst_23 = arith.constant dense<0.000000e+00> : vector<2x8x8xf32>
    %43 = tpu.matmul %38, %40, %cst_23 {dimension_numbers = #tpu.dot_dimension_numbers<[2], [2], [1], [1], [0, 0, 0, 1, 1, 1], [0], [0]>} : vector<2x8x8xf32>, vector<2x8x8xf32>, vector<2x8x8xf32> -> vector<2x8x8xf32>
    "tpu.trace_stop"() : () -> ()
    %44 = arith.addf %43, %15 : vector<2x8x8xf32>
    %cst_24 = arith.constant dense<0xFF800000> : vector<2x8xf32>
    %45 = vector.multi_reduction <maximumf>, %44, %cst_24 [2] : vector<2x8x8xf32> to vector<2x8xf32>
    %46 = vector.shape_cast %45 : vector<2x8xf32> to vector<2x8x1xf32>
    %47 = vector.broadcast %46 : vector<2x8x1xf32> to vector<2x8x8xf32>
    %48 = arith.subf %44, %47 : vector<2x8x8xf32>
    %49 = math.exp %48 : vector<2x8x8xf32>
    %cst_25 = arith.constant dense<0.000000e+00> : vector<2x8xf32>
    %50 = vector.multi_reduction <add>, %49, %cst_25 [2] : vector<2x8x8xf32> to vector<2x8xf32>
    %51 = vector.shape_cast %50 : vector<2x8xf32> to vector<2x8x1xf32>
    "tpu.trace_start"() <{level = 10 : i32, message = "bts,bsd->btd"}> : () -> ()
    %cst_26 = arith.constant dense<0.000000e+00> : vector<2x8x8xf32>
    %52 = tpu.matmul %49, %42, %cst_26 {dimension_numbers = #tpu.dot_dimension_numbers<[2], [1], [1], [2], [0, 0, 0, 1, 1, 2], [0], [0]>} : vector<2x8x8xf32>, vector<2x8x8xf32>, vector<2x8x8xf32> -> vector<2x8x8xf32>
    "tpu.trace_stop"() : () -> ()
    %53 = tpu.reciprocal %51 : vector<2x8x1xf32> -> vector<2x8x1xf32>
    %54 = vector.broadcast %53 : vector<2x8x1xf32> to vector<2x8x8xf32>
    %55 = arith.mulf %52, %54 : vector<2x8x8xf32>
    %56 = vector.shape_cast %55 : vector<2x8x8xf32> to vector<16x8xf32>
    %c0_27 = arith.constant 0 : index
    %c8_28 = arith.constant 8 : index
    %57 = vector.load %arg8[%c0_27, %c8_28] : memref<16x32xf32, #tpu.memory_space<vmem>>, vector<16x8xf32>
    tpu.vector_store %arg8[%c0_27, %c8_28], %56 {strides = array<i32>} : memref<16x32xf32, #tpu.memory_space<vmem>>, vector<16x8xf32>,
    %c0_29 = arith.constant 0 : index
    %c16 = arith.constant 16 : index
    %58 = vector.load %arg7[%c0_29, %c16] : memref<16x96xf32, #tpu.memory_space<vmem>>, vector<16x8xf32>
    %59 = vector.shape_cast %58 : vector<16x8xf32> to vector<2x8x8xf32>
    %c0_30 = arith.constant 0 : index
    %c48 = arith.constant 48 : index
    %60 = vector.load %arg7[%c0_30, %c48] : memref<16x96xf32, #tpu.memory_space<vmem>>, vector<16x8xf32>
    %61 = vector.shape_cast %60 : vector<16x8xf32> to vector<2x8x8xf32>
    %c0_31 = arith.constant 0 : index
    %c80 = arith.constant 80 : index
    %62 = vector.load %arg7[%c0_31, %c80] : memref<16x96xf32, #tpu.memory_space<vmem>>, vector<16x8xf32>
    %63 = vector.shape_cast %62 : vector<16x8xf32> to vector<2x8x8xf32>
    "tpu.trace_start"() <{level = 10 : i32, message = "btd,bsd->bts"}> : () -> ()
    %cst_32 = arith.constant dense<0.000000e+00> : vector<2x8x8xf32>
    %64 = tpu.matmul %59, %61, %cst_32 {dimension_numbers = #tpu.dot_dimension_numbers<[2], [2], [1], [1], [0, 0, 0, 1, 1, 1], [0], [0]>} : vector<2x8x8xf32>, vector<2x8x8xf32>, vector<2x8x8xf32> -> vector<2x8x8xf32>
    "tpu.trace_stop"() : () -> ()
    %65 = arith.addf %64, %15 : vector<2x8x8xf32>
    %cst_33 = arith.constant dense<0xFF800000> : vector<2x8xf32>
    %66 = vector.multi_reduction <maximumf>, %65, %cst_33 [2] : vector<2x8x8xf32> to vector<2x8xf32>
    %67 = vector.shape_cast %66 : vector<2x8xf32> to vector<2x8x1xf32>
    %68 = vector.broadcast %67 : vector<2x8x1xf32> to vector<2x8x8xf32>
    %69 = arith.subf %65, %68 : vector<2x8x8xf32>
    %70 = math.exp %69 : vector<2x8x8xf32>
    %cst_34 = arith.constant dense<0.000000e+00> : vector<2x8xf32>
    %71 = vector.multi_reduction <add>, %70, %cst_34 [2] : vector<2x8x8xf32> to vector<2x8xf32>
    %72 = vector.shape_cast %71 : vector<2x8xf32> to vector<2x8x1xf32>
    "tpu.trace_start"() <{level = 10 : i32, message = "bts,bsd->btd"}> : () -> ()
    %cst_35 = arith.constant dense<0.000000e+00> : vector<2x8x8xf32>
    %73 = tpu.matmul %70, %63, %cst_35 {dimension_numbers = #tpu.dot_dimension_numbers<[2], [1], [1], [2], [0, 0, 0, 1, 1, 2], [0], [0]>} : vector<2x8x8xf32>, vector<2x8x8xf32>, vector<2x8x8xf32> -> vector<2x8x8xf32>
    "tpu.trace_stop"() : () -> ()
    %74 = tpu.reciprocal %72 : vector<2x8x1xf32> -> vector<2x8x1xf32>
    %75 = vector.broadcast %74 : vector<2x8x1xf32> to vector<2x8x8xf32>
    %76 = arith.mulf %73, %75 : vector<2x8x8xf32>
    %77 = vector.shape_cast %76 : vector<2x8x8xf32> to vector<16x8xf32>
    %c0_36 = arith.constant 0 : index
    %c16_37 = arith.constant 16 : index
    %78 = vector.load %arg8[%c0_36, %c16_37] : memref<16x32xf32, #tpu.memory_space<vmem>>, vector<16x8xf32>
    tpu.vector_store %arg8[%c0_36, %c16_37], %77 {strides = array<i32>} : memref<16x32xf32, #tpu.memory_space<vmem>>, vector<16x8xf32>,
    %c0_38 = arith.constant 0 : index
    %c24 = arith.constant 24 : index
    %79 = vector.load %arg7[%c0_38, %c24] : memref<16x96xf32, #tpu.memory_space<vmem>>, vector<16x8xf32>
    %80 = vector.shape_cast %79 : vector<16x8xf32> to vector<2x8x8xf32>
    %c0_39 = arith.constant 0 : index
    %c56 = arith.constant 56 : index
    %81 = vector.load %arg7[%c0_39, %c56] : memref<16x96xf32, #tpu.memory_space<vmem>>, vector<16x8xf32>
    %82 = vector.shape_cast %81 : vector<16x8xf32> to vector<2x8x8xf32>
    %c0_40 = arith.constant 0 : index
    %c88 = arith.constant 88 : index
    %83 = vector.load %arg7[%c0_40, %c88] : memref<16x96xf32, #tpu.memory_space<vmem>>, vector<16x8xf32>
    %84 = vector.shape_cast %83 : vector<16x8xf32> to vector<2x8x8xf32>
    "tpu.trace_start"() <{level = 10 : i32, message = "btd,bsd->bts"}> : () -> ()
    %cst_41 = arith.constant dense<0.000000e+00> : vector<2x8x8xf32>
    %85 = tpu.matmul %80, %82, %cst_41 {dimension_numbers = #tpu.dot_dimension_numbers<[2], [2], [1], [1], [0, 0, 0, 1, 1, 1], [0], [0]>} : vector<2x8x8xf32>, vector<2x8x8xf32>, vector<2x8x8xf32> -> vector<2x8x8xf32>
    "tpu.trace_stop"() : () -> ()
    %86 = arith.addf %85, %15 : vector<2x8x8xf32>
    %cst_42 = arith.constant dense<0xFF800000> : vector<2x8xf32>
    %87 = vector.multi_reduction <maximumf>, %86, %cst_42 [2] : vector<2x8x8xf32> to vector<2x8xf32>
    %88 = vector.shape_cast %87 : vector<2x8xf32> to vector<2x8x1xf32>
    %89 = vector.broadcast %88 : vector<2x8x1xf32> to vector<2x8x8xf32>
    %90 = arith.subf %86, %89 : vector<2x8x8xf32>
    %91 = math.exp %90 : vector<2x8x8xf32>
    %cst_43 = arith.constant dense<0.000000e+00> : vector<2x8xf32>
    %92 = vector.multi_reduction <add>, %91, %cst_43 [2] : vector<2x8x8xf32> to vector<2x8xf32>
    %93 = vector.shape_cast %92 : vector<2x8xf32> to vector<2x8x1xf32>
    "tpu.trace_start"() <{level = 10 : i32, message = "bts,bsd->btd"}> : () -> ()
    %cst_44 = arith.constant dense<0.000000e+00> : vector<2x8x8xf32>
    %94 = tpu.matmul %91, %84, %cst_44 {dimension_numbers = #tpu.dot_dimension_numbers<[2], [1], [1], [2], [0, 0, 0, 1, 1, 2], [0], [0]>} : vector<2x8x8xf32>, vector<2x8x8xf32>, vector<2x8x8xf32> -> vector<2x8x8xf32>
    "tpu.trace_stop"() : () -> ()
    %95 = tpu.reciprocal %93 : vector<2x8x1xf32> -> vector<2x8x1xf32>
    %96 = vector.broadcast %95 : vector<2x8x1xf32> to vector<2x8x8xf32>
    %97 = arith.mulf %94, %96 : vector<2x8x8xf32>
    %98 = vector.shape_cast %97 : vector<2x8x8xf32> to vector<16x8xf32>
    %c0_45 = arith.constant 0 : index
    %c24_46 = arith.constant 24 : index
    %99 = vector.load %arg8[%c0_45, %c24_46] : memref<16x32xf32, #tpu.memory_space<vmem>>, vector<16x8xf32>
    tpu.vector_store %arg8[%c0_45, %c24_46], %98 {strides = array<i32>} : memref<16x32xf32, #tpu.memory_space<vmem>>, vector<16x8xf32>,
    %c0_47 = arith.constant 0 : index
    %c0_48 = arith.constant 0 : index
    %100 = vector.load %arg8[%c0_47, %c0_48] : memref<16x32xf32, #tpu.memory_space<vmem>>, vector<16x32xf32>
    %c0_49 = arith.constant 0 : index
    %c0_50 = arith.constant 0 : index
    %101 = vector.load %arg4[%c0_49, %c0_50] : memref<32x32xf32, #tpu.memory_space<vmem>>, vector<32x32xf32>
    %cst_51 = arith.constant dense<0.000000e+00> : vector<16x32xf32>
    %102 = tpu.matmul %100, %101, %cst_51 {dimension_numbers = #tpu.dot_dimension_numbers<[1], [0], [0], [1], [0, 0, 1, 1], [], []>} : vector<16x32xf32>, vector<32x32xf32>, vector<16x32xf32> -> vector<16x32xf32>
    %c0_52 = arith.constant 0 : index
    %c0_53 = arith.constant 0 : index
    %103 = vector.load %arg5[%c0_52, %c0_53] : memref<1x32xf32, #tpu.memory_space<vmem>>, vector<1x32xf32>
    %104 = vector.broadcast %103 : vector<1x32xf32> to vector<16x32xf32>
    %105 = arith.addf %102, %104 : vector<16x32xf32>
    %106 = vector.shape_cast %105 : vector<16x32xf32> to vector<2x8x32xf32>
    %c0_54 = arith.constant 0 : index
    %c0_55 = arith.constant 0 : index
    %c0_56 = arith.constant 0 : index
    %107 = vector.load %arg6[%c0_54, %c0_55, %c0_56] : memref<2x8x32xf32, #tpu.memory_space<vmem>>, vector<2x8x32xf32>
    tpu.vector_store %arg6[%c0_54, %c0_55, %c0_56], %106 {strides = array<i32>} : memref<2x8x32xf32, #tpu.memory_space<vmem>>, vector<2x8x32xf32>,
    return
  }
  func.func @transform_0(%arg0: i32) -> (i32, i32, i32) {
    %c0_i32 = arith.constant 0 : i32
    %c0_i32_0 = arith.constant 0 : i32
    %c0_i32_1 = arith.constant 0 : i32
    return %arg0, %c0_i32, %c0_i32_0 : i32, i32, i32
  }
  func.func @transform_1(%arg0: i32) -> (i32, i32) {
    %c0_i32 = arith.constant 0 : i32
    %c0_i32_0 = arith.constant 0 : i32
    %c0_i32_1 = arith.constant 0 : i32
    return %c0_i32, %c0_i32_0 : i32, i32
  }
  func.func @transform_2(%arg0: i32) -> (i32, i32) {
    %c0_i32 = arith.constant 0 : i32
    %c0_i32_0 = arith.constant 0 : i32
    %c0_i32_1 = arith.constant 0 : i32
    return %c0_i32, %c0_i32_0 : i32, i32
  }
  func.func @transform_3(%arg0: i32) -> (i32, i32) {
    %c0_i32 = arith.constant 0 : i32
    %c0_i32_0 = arith.constant 0 : i32
    %c0_i32_1 = arith.constant 0 : i32
    return %c0_i32, %c0_i32_0 : i32, i32
  }
  func.func @transform_4(%arg0: i32) -> (i32, i32) {
    %c0_i32 = arith.constant 0 : i32
    %c0_i32_0 = arith.constant 0 : i32
    %c0_i32_1 = arith.constant 0 : i32
    return %c0_i32, %c0_i32_0 : i32, i32
  }
  func.func @transform_5(%arg0: i32) -> (i32, i32, i32) {
    %c0_i32 = arith.constant 0 : i32
    %c0_i32_0 = arith.constant 0 : i32
    %c0_i32_1 = arith.constant 0 : i32
    return %arg0, %c0_i32, %c0_i32_0 : i32, i32, i32
  }
}

</mosaic_0001>

<bundles_post_ra>
// kernel: tpu_custom_call.1
= control target key start
LH: loop header
LB: loop body
LE: loop exit
PB: predicated region body
PF: predicated region fallthrough
CT: control target
= control target key end

     0   :  { %10 = vsyncpa [#allocation5], 0  ;;  %s2225_s0 = inlined_call_operand.hbm [shape: f32[2,8,32], index: 0, kind: input, shape index: {}]   ;;  %s2226_s1 = inlined_call_operand.hbm [shape: f32[32,96], index: 1, kind: input, shape index: {}]   ;;  %s2227_s2 = inlined_call_operand.vmem [shape: f32[1,96], index: 2, kind: input, shape index: {}]   ;;  %s2228_s3 = inlined_call_operand.hbm [shape: f32[32,32], index: 3, kind: input, shape index: {}]   ;;  %s2229_s4 = inlined_call_operand.vmem [shape: f32[1,32], index: 4, kind: input, shape index: {}]   ;;  %s2230_s5 = inlined_call_operand.hbm [shape: f32[2,8,32], index: 5, kind: output, shape index: {}]  }
   0x1   :  { %11 = vsyncpa [#allocation8], 0 }
   0x2   :  { %12 = vsyncpa [#allocation6], 0  ;;  %s1964_s18 = smov [#allocation7]   ;;  %s1965_s20 = smov [#allocation4]  }
   0x3   :  { %s30_s19 = sshll.u32 %s1964_s18, 4  ;;  %s18_s21 = sshll.u32 %s1965_s20, 4  ;;  %s31_s19 = int_to_ptr.vmem [resolvable:$true] %s30_s19  ;;  %s19_s21 = int_to_ptr.vmem [resolvable:$true] %s18_s21 }
   0x4   :  { %s1886_s22 = scalar_lea.vmem %s31_s19, 512  ;;  %p1891_p1 = scmp.lt.s32.totalorder %s31_s19, %s31_s19 }
   0x5   :  { %p1887_p0 = scmp.ne.s32.totalorder %s31_s19, %s1886_s22  ;;  %p1892_p2 = scmp.lt.s32.totalorder %s1886_s22, %s1886_s22 }
   0x7   :  { %p1893_p3 = por %p1892_p2, %p1891_p1 }
   0x9   :  { %p1894_p4 = pnand %p1893_p3, %p1887_p0 }
   0xb   :  { %1897 = shalt.err (!%p1894_p4)
}
   0xc   :  { %s1966_s23 = smov 128   ;;  %s1967_s24 = smov 8  }
   0xd   :  { %36 = dma.hbm_to_vmem [thread:$0]  %s2226_s1, 512, %s31_s19, [#allocation8], %s1966_s23, %s1966_s23, %s1967_s24  }
   0xe   :  { %s1906_s27 = scalar_lea.vmem %s19_s21, 256  ;;  %p1911_p6 = scmp.lt.s32.totalorder %s19_s21, %s19_s21 }
   0xf   :  { %p1907_p5 = scmp.ne.s32.totalorder %s19_s21, %s1906_s27  ;;  %p1912_p7 = scmp.lt.s32.totalorder %s1906_s27, %s1906_s27 }
  0x11   :  { %p1913_p8 = por %p1912_p7, %p1911_p6 }
  0x13   :  { %p1914_p9 = pnand %p1913_p8, %p1907_p5 }
  0x15   :  { %1917 = shalt.err (!%p1914_p9)
}
  0x16   :  { %24 = dma.hbm_to_vmem [thread:$0]  %s2225_s0, 256, %s19_s21, [#allocation5], %s1966_s23, %s1966_s23, %s1967_s24  }
  0x17   :  { %s1968_s30 = smov [#allocation9]  }
  0x18   :  { %s44_s6 = sshll.u32 %s1968_s30, 4  ;;  %s45_s6 = int_to_ptr.vmem [resolvable:$true] %s44_s6 }
  0x19   :  { %s1926_s7 = scalar_lea.vmem %s45_s6, 512  ;;  %p1931_p11 = scmp.lt.s32.totalorder %s45_s6, %s45_s6 }
  0x1a   :  { %p1927_p10 = scmp.ne.s32.totalorder %s45_s6, %s1926_s7  ;;  %p1932_p12 = scmp.lt.s32.totalorder %s1926_s7, %s1926_s7 }
  0x1c   :  { %p1933_p13 = por %p1932_p12, %p1931_p11 }
  0x1e   :  { %p1934_p0 = pnand %p1933_p13, %p1927_p10 }
  0x20   :  { %1937 = shalt.err (!%p1934_p0)
}
  0x21   :  { %50 = dma.hbm_to_vmem [thread:$0]  %s2228_s3, 512, %s45_s6, [#allocation8], %s1966_s23, %s1966_s23, %s1967_s24  }
  0x22   :  { %1958 = dma.done.wait [#allocation5], 256  }
  0x23   :  { %1959 = vsyncadd [#allocation5], 4294967040 }
  0x24   :  { %1960 = dma.done.wait [#allocation8], 1024  }
  0x25   :  { %1961 = vsyncadd [#allocation8], 4294966272  ;;  %vm75_vm0 = vcmask 261120   ;;  %v67_v0 = vld [vmem:[#allocation7 + $0x18] sm:$0xff]  ;;  %v66_v1 = vld [vmem:[#allocation7 + $0x10] sm:$0xff]  ;;  %v1969_v6 = vmov 0.0   ;;  %v160_v22 = vlaneseq }
  0x26   :  { %1722 = vmatprep.subr.mxu0 %v67_v0  ;;  %v62_v2 = vld [vmem:[#allocation4] sm:$0xff]  ;;  %v65_v3 = vld [vmem:[#allocation7 + $0x8] sm:$0xff]  ;;  %v64_v4 = vld [vmem:[#allocation7] sm:$0xff]  ;;  %1733 = vmatprep.subr.mxu1 %v1969_v6  ;;  %vm157_vm1 = vcmask 785408   ;;  %vm1970_vm2 = vmmov 0   ;;  %s1971_s9 = smov 96  }
  0x27   :  { %1723 = vmatpush3.msra.mxu0 %v67_v0  ;;  %1730 = vmatprep.mubr.msk.f32.mxu0 %vm75_vm0, %v62_v2  ;;  %v63_v5 = vld [vmem:[#allocation4 + $0x8] sm:$0xff]  ;;  %v1648_v7 = vld [vmem:[%s2227_s2] ss:$0 sm:$0xff]  ;;  %s1972_s2 = smov 64   ;;  %s1973_s10 = smov 88   ;;  %vm171_vm3 = vcmask 64512  }
  0x28   :  { %1724 = vmatprep.subr.mxu0 %v66_v1  ;;  %1735 = vmatprep.mubr.msk.f32.mxu1 %vm1970_vm2, %v1969_v6  ;;  %s1974_s11 = smov 120   ;;  %s1975_s12 = smov 56   ;;  %v161_v23 = vshrl.u32 %v160_v22, 7  ;;  %v163_v24 = vand.u32 127, %v160_v22  ;;  %v1976_v25 = vmov -1e+30  }
  0x29   :  { %1725 = vmatpush3.msra.mxu0 %v66_v1  ;;  %s1977_s13 = smov 80   ;;  %s1978_s14 = smov 112   ;;  %vm841_vm5 = vcmask 130112   ;;  %vm1186_vm6 = vcmask 195712   ;;  %vm1531_vm7 = vcmask 261312  }
  0x2a   :  { %1726 = vmatprep.subr.mxu0 %v65_v3  ;;  %vm164_vm4 = vcmp.ge.s32.totalorder %v161_v23, %v163_v24  ;;  %s1979_s15 = smov 48   ;;  %s1980_s16 = smov 72  }
  0x2b   :  { %1727 = vmatpush3.msra.mxu0 %v65_v3  ;;  %v2078_v26 = vsel %vm164_vm4, 0.0, %v1976_v25  ;;  %s1981_s17 = smov 104   ;;  %s1982_s18 = smov 40  }
  0x2c   :  { %1728 = vmatprep.subr.mxu0 %v64_v4  ;;  %s1983_s19 = smov 16   ;;  %s1984_s20 = smov 24  }
  0x2d   :  { %1729 = vmatpush3.msra.mxu0 %v64_v4  ;;  %s1985_s25 = smov [#allocation10]  }
  0x2e   :  { %1731 = vmatmul.mubr.msk.f32.vlgmr.msra.gmra.mxu0 %vm75_vm0, %v63_v5  ;;  %1753 = vmatprep.subr.mxu0 %v1969_v6  ;;  %s1635_s26 = sshll.u32 %s1985_s25, 4  ;;  %s1636_s26 = int_to_ptr.vmem [resolvable:$true] %s1635_s26 }
  0x2f   :  { %1755 = vmatprep.mubr.msk.f32.mxu0 %vm1970_vm2, %v1969_v6  ;;  %s1938_s27 = scalar_lea.vmem %s1636_s26, 256  ;;  %p1943_p2 = scmp.lt.s32.totalorder %s1636_s26, %s1636_s26 }
  0x30   :  { %p1939_p1 = scmp.ne.s32.totalorder %s1636_s26, %s1938_s27  ;;  %p1944_p3 = scmp.lt.s32.totalorder %s1938_s27, %s1938_s27 }
  0x32   :  { %p1945_p4 = por %p1944_p3, %p1943_p2 }
  0x34   :  { %p1946_p5 = pnand %p1945_p4, %p1939_p1 }
  0xee   :  { %v1732_v8 = vpop.f32.mrf.mxu0 }
  0xef   :  { %v154_v9 = vadd.f32 %v1732_v8, %v1648_v7 }
  0xf0   :  { %v148_v10 = vpop.f32.mrf.mxu0 }
  0xf1   :  { %159 = vst.msk [vmem:[#allocation2 + $0x8] sm:$0xff] %vm157_vm1, %v154_v9  ;;  %v149_v11 = vadd.f32 %v1648_v7, %v148_v10 }
  0xf3   :  { %158 = vst.msk [vmem:[#allocation2] sm:$0xff] %vm157_vm1, %v149_v11 }
  0xf8   :  { %v2048_v13 = vld [vmem:[#allocation2 + $0x8] sm:$0xff] }
  0xfa   :  { %v2045_v12 = vld [vmem:[#allocation2] sm:$0xff] }
  0xfb   :  { %169 = vrot.lane.b32.xlu0 %v2045_v12, %s1971_s9 }
  0xff   :  { %247 = vrot.lane.b32.xlu0 %v2048_v13, %s1971_s9 }
 0x103   :  { %341 = vrot.lane.b32.xlu0 %v2045_v12, %s1972_s2 }
 0x107   :  { %504 = vrot.lane.b32.xlu0 %v2045_v12, %s1973_s10 }
 0x10b   :  { %583 = vrot.lane.b32.xlu0 %v2048_v13, %s1973_s10 }
 0x10f   :  { %502 = vrot.lane.b32.xlu0 %v2045_v12, %s1974_s11 }
 0x113   :  { %581 = vrot.lane.b32.xlu0 %v2048_v13, %s1974_s11 }
 0x117   :  { %677 = vrot.lane.b32.xlu0 %v2045_v12, %s1975_s12 }
 0x16d   :  { %v170_v14 = vpop.permute.xlu0 %169 }
 0x16e   :  { %1734 = vmatpush3.xpose.msk.msra.mxu1 %vm171_vm3, %v170_v14 }
 0x16f   :  { %1738 = vmatprep.subr.mxu1 %v1969_v6 }
 0x171   :  { %1736 = vmatmul.mubr.msk.f32.vlgmr.msra.gmra.mxu1 %vm171_vm3, %v2045_v12  ;;  %v248_v15 = vpop.permute.xlu0 %247 }
 0x172   :  { %1739 = vmatpush3.xpose.msk.msra.mxu1 %vm171_vm3, %v248_v15  ;;  %1740 = vmatprep.mubr.msk.f32.mxu1 %vm1970_vm2, %v1969_v6 }
 0x173   :  { %1743 = vmatprep.subr.mxu1 %v1969_v6 }
 0x175   :  { %1741 = vmatmul.mubr.msk.f32.vlgmr.msra.gmra.mxu1 %vm171_vm3, %v2048_v13  ;;  %v342_v16 = vpop.permute.xlu0 %341 }
 0x176   :  { %1744 = vmatpush3.msra.mxu1 %v342_v16  ;;  %1745 = vmatprep.mubr.msk.f32.mxu1 %vm1970_vm2, %v1969_v6 }
 0x177   :  { %1748 = vmatprep.subr.mxu1 %v1969_v6 }
 0x179   :  { %v505_v17 = vpop.permute.xlu0 %504 }
 0x17a   :  { %1754 = vmatpush3.xpose.msk.msra.mxu0 %vm171_vm3, %v505_v17 }
 0x17b   :  { %1763 = vmatprep.subr.mxu0 %v1969_v6 }
 0x17d   :  { %v584_v18 = vpop.permute.xlu0 %583 }
 0x181   :  { %v503_v19 = vpop.permute.xlu0 %502 }
 0x182   :  { %1756 = vmatmul.mubr.msk.f32.vlgmr.msra.gmra.mxu0 %vm171_vm3, %v503_v19 }
 0x183   :  { %1765 = vmatprep.mubr.msk.f32.mxu0 %vm1970_vm2, %v1969_v6 }
 0x185   :  { %v582_v20 = vpop.permute.xlu0 %581 }
 0x189   :  { %v678_v21 = vpop.permute.xlu0 %677 }
 0x18a   :  { %1764 = vmatpush3.msra.mxu0 %v678_v21 }
 0x18b   :  { %1773 = vmatprep.subr.mxu0 %v1969_v6 }
 0x231   :  { %v242_v27 = vpop.f32.mrf.mxu1 }
 0x232   :  { %v243_v28 = vadd.f32 %v242_v27, %v2078_v26 }
 0x233   :  { %v1737_v29 = vpop.f32.mrf.mxu1 }
 0x234   :  { %v323_v30 = vsel %vm171_vm3, %v243_v28, -inf }
 0x235   :  { %324 = vmax.xlane.f32.xlu1 %v323_v30  ;;  %v319_v31 = vpop.f32.mrf.mxu1 }
 0x236   :  { %v320_v32 = vadd.f32 %v319_v31, %v2078_v26 }
 0x237   :  { %v1742_v33 = vpop.f32.mrf.mxu1 }
 0x238   :  { %v326_v34 = vsel %vm171_vm3, %v320_v32, -inf }
 0x239   :  { %327 = vmax.xlane.f32.xlu1 %v326_v34 }
 0x242   :  { %v576_v35 = vpop.f32.mrf.mxu0 }
 0x243   :  { %v577_v37 = vadd.f32 %v576_v35, %v2078_v26 }
 0x244   :  { %v1757_v36 = vpop.f32.mrf.mxu0 }
 0x245   :  { %v659_v38 = vsel %vm171_vm3, %v577_v37, -inf }
 0x24a   :  { %417 = vrot.lane.b32.xlu1 %v2048_v13, %s1972_s2 }
 0x26e   :  { %660 = vmax.xlane.f32.xlu1 %v659_v38 }
 0x27f   :  { %753 = vrot.lane.b32.xlu1 %v2048_v13, %s1975_s12 }
 0x283   :  { %849 = vrot.lane.b32.xlu1 %v2045_v12, %s1977_s13 }
 0x287   :  { %847 = vrot.lane.b32.xlu1 %v2045_v12, %s1978_s14 }
 0x2be   :  { %v325_v39 = vpop.xlane.xlu1 %324 }
 0x2bf   :  { %v329_v40 = vsub.f32 %v243_v28, %v325_v39 }
 0x2c1   :  { %v331_v41 = vmul.f32 1.442695, %v329_v40 }
 0x2c2   :  { %v328_v42 = vpop.xlane.xlu1 %327 }
 0x2c3   :  { %1846 = vpow2.f32 %v331_v41  ;;  %v330_v43 = vsub.f32 %v320_v32, %v328_v42 }
 0x2c5   :  { %v333_v44 = vmul.f32 1.442695, %v330_v43 }
 0x2c6   :  { %v418_v46 = vpop.permute.xlu1 %417 }
 0x2c7   :  { %1848 = vpow2.f32 %v333_v44 }
 0x2d0   :  { %v2094_v45 = vpop.eup %1846 }
 0x2d1   :  { %1746 = vmatmul.mubr.msk.f32.vlgmr.msra.gmra.mxu1 %vm171_vm3, %v2094_v45 }
 0x2d2   :  { %1749 = vmatpush3.msra.mxu1 %v418_v46  ;;  %1750 = vmatprep.mubr.msk.f32.mxu1 %vm1970_vm2, %v1969_v6 }
 0x2d3   :  { %1758 = vmatprep.subr.mxu1 %v1969_v6 }
 0x2d4   :  { %v2101_v47 = vpop.eup %1848 }
 0x2d5   :  { %1751 = vmatmul.mubr.msk.f32.vlgmr.msra.gmra.mxu1 %vm171_vm3, %v2101_v47 }
 0x2d6   :  { %1759 = vmatpush3.xpose.msk.msra.mxu1 %vm171_vm3, %v584_v18  ;;  %1760 = vmatprep.mubr.msk.f32.mxu1 %vm1970_vm2, %v1969_v6 }
 0x2d7   :  { %1768 = vmatprep.subr.mxu1 %v1969_v6 }
 0x2d9   :  { %1761 = vmatmul.mubr.msk.f32.vlgmr.msra.gmra.mxu1 %vm171_vm3, %v582_v20 }
 0x2da   :  { %1770 = vmatprep.mubr.msk.f32.mxu1 %vm1970_vm2, %v1969_v6 }
 0x2f7   :  { %v661_v48 = vpop.xlane.xlu1 %660 }
 0x2f8   :  { %v665_v49 = vsub.f32 %v577_v37, %v661_v48 }
 0x2fa   :  { %v667_v50 = vmul.f32 1.442695, %v665_v49 }
 0x2fb   :  { %v754_v51 = vpop.permute.xlu1 %753 }
 0x2fc   :  { %1850 = vpow2.f32 %v667_v50  ;;  %1769 = vmatpush3.msra.mxu1 %v754_v51 }
 0x2fd   :  { %1778 = vmatprep.subr.mxu1 %v1969_v6 }
 0x2ff   :  { %v850_v52 = vpop.permute.xlu1 %849 }
 0x303   :  { %v848_v54 = vpop.permute.xlu1 %847 }
 0x309   :  { %v2113_v53 = vpop.eup %1850 }
 0x30a   :  { %1766 = vmatmul.mubr.msk.f32.vlgmr.msra.gmra.mxu0 %vm171_vm3, %v2113_v53  ;;  %v671_v35 = vsel %vm171_vm3, %v2113_v53, 0.0 }
 0x30b   :  { %1774 = vmatpush3.xpose.msk.msra.mxu0 %vm171_vm3, %v850_v52  ;;  %1775 = vmatprep.mubr.msk.f32.mxu0 %vm1970_vm2, %v1969_v6 }
 0x30c   :  { %1783 = vmatprep.subr.mxu0 %v1969_v6 }
 0x30e   :  { %1776 = vmatmul.mubr.msk.f32.vlgmr.msra.gmra.mxu0 %vm171_vm3, %v848_v54 }
 0x30f   :  { %1785 = vmatprep.mubr.msk.f32.mxu0 %vm1970_vm2, %v1969_v6 }
 0x391   :  { %v2124_v55 = vpop.f32.mrf.mxu1 }
 0x393   :  { %v1747_v56 = vpop.f32.mrf.mxu1 }
 0x395   :  { %v2126_v57 = vpop.f32.mrf.mxu1 }
 0x397   :  { %v1752_v58 = vpop.f32.mrf.mxu1 }
 0x399   :  { %v655_v59 = vpop.f32.mrf.mxu1 }
 0x39a   :  { %v656_v60 = vadd.f32 %v655_v59, %v2078_v26 }
 0x39b   :  { %v1762_v61 = vpop.f32.mrf.mxu1 }
 0x39c   :  { %v662_v62 = vsel %vm171_vm3, %v656_v60, -inf }
 0x39d   :  { %663 = vmax.xlane.f32.xlu0 %v662_v62 }
 0x3b3   :  { %928 = vrot.lane.b32.xlu0 %v2048_v13, %s1977_s13 }
 0x3b7   :  { %926 = vrot.lane.b32.xlu0 %v2048_v13, %s1978_s14 }
 0x3bb   :  { %1022 = vrot.lane.b32.xlu0 %v2045_v12, %s1979_s15 }
 0x3ca   :  { %v2135_v63 = vpop.f32.mrf.mxu0 }
 0x3cc   :  { %v1767_v0 = vpop.f32.mrf.mxu0 }
 0x3ce   :  { %v921_v1 = vpop.f32.mrf.mxu0 }
 0x3cf   :  { %v922_v2 = vadd.f32 %v921_v1, %v2078_v26 }
 0x3d0   :  { %v1777_v3 = vpop.f32.mrf.mxu0 }
 0x3d1   :  { %v1004_v4 = vsel %vm171_vm3, %v922_v2, -inf }
 0x3d2   :  { %1005 = vmax.xlane.f32.xlu1 %v1004_v4 }
 0x3e3   :  { %1098 = vrot.lane.b32.xlu1 %v2048_v13, %s1979_s15 }
 0x3e7   :  { %1194 = vrot.lane.b32.xlu1 %v2045_v12, %s1980_s16 }
 0x3eb   :  { %1192 = vrot.lane.b32.xlu1 %v2045_v12, %s1981_s17 }
 0x426   :  { %v664_v5 = vpop.xlane.xlu0 %663 }
 0x427   :  { %v666_v7 = vsub.f32 %v656_v60, %v664_v5 }
 0x429   :  { %v669_v8 = vmul.f32 1.442695, %v666_v7 }
 0x42a   :  { %v929_v9 = vpop.permute.xlu0 %928 }
 0x42b   :  { %1852 = vpow2.f32 %v669_v8 }
 0x42e   :  { %v927_v10 = vpop.permute.xlu0 %926 }
 0x432   :  { %v1023_v11 = vpop.permute.xlu0 %1022 }
 0x433   :  { %1784 = vmatpush3.msra.mxu0 %v1023_v11 }
 0x434   :  { %1793 = vmatprep.subr.mxu0 %v1969_v6 }
 0x438   :  { %v2145_v14 = vpop.eup %1852 }
 0x439   :  { %1771 = vmatmul.mubr.msk.f32.vlgmr.msra.gmra.mxu1 %vm171_vm3, %v2145_v14 }
 0x43a   :  { %1779 = vmatpush3.xpose.msk.msra.mxu1 %vm171_vm3, %v929_v9  ;;  %1780 = vmatprep.mubr.msk.f32.mxu1 %vm1970_vm2, %v1969_v6 }
 0x43b   :  { %1788 = vmatprep.subr.mxu1 %v1969_v6 }
 0x43d   :  { %1781 = vmatmul.mubr.msk.f32.vlgmr.msra.gmra.mxu1 %vm171_vm3, %v927_v10 }
 0x43e   :  { %1790 = vmatprep.mubr.msk.f32.mxu1 %vm1970_vm2, %v1969_v6 }
 0x45b   :  { %v1006_v15 = vpop.xlane.xlu1 %1005 }
 0x45c   :  { %v1010_v16 = vsub.f32 %v922_v2, %v1006_v15 }
 0x45e   :  { %v1012_v17 = vmul.f32 1.442695, %v1010_v16 }
 0x45f   :  { %v1099_v18 = vpop.permute.xlu1 %1098 }
 0x460   :  { %1854 = vpow2.f32 %v1012_v17  ;;  %1789 = vmatpush3.msra.mxu1 %v1099_v18 }
 0x461   :  { %1798 = vmatprep.subr.mxu1 %v1969_v6 }
 0x463   :  { %v1195_v19 = vpop.permute.xlu1 %1194 }
 0x467   :  { %v1193_v21 = vpop.permute.xlu1 %1192 }
 0x46d   :  { %v1855_v20 = vpop.eup %1854 }
 0x46e   :  { %1786 = vmatmul.mubr.msk.f32.vlgmr.msra.gmra.mxu0 %vm171_vm3, %v1855_v20  ;;  %v1016_v54 = vsel %vm171_vm3, %v1855_v20, 0.0 }
 0x46f   :  { %1794 = vmatpush3.xpose.msk.msra.mxu0 %vm171_vm3, %v1195_v19  ;;  %1795 = vmatprep.mubr.msk.f32.mxu0 %vm1970_vm2, %v1969_v6 }
 0x470   :  { %1803 = vmatprep.subr.mxu0 %v1969_v6 }
 0x472   :  { %1796 = vmatmul.mubr.msk.f32.vlgmr.msra.gmra.mxu0 %vm171_vm3, %v1193_v21 }
 0x473   :  { %1805 = vmatprep.mubr.msk.f32.mxu0 %vm1970_vm2, %v1969_v6 }
 0x4f9   :  { %v2165_v22 = vpop.f32.mrf.mxu1 }
 0x4fb   :  { %v1772_v23 = vpop.f32.mrf.mxu1 }
 0x4fd   :  { %v1000_v24 = vpop.f32.mrf.mxu1 }
 0x4fe   :  { %v1001_v25 = vadd.f32 %v1000_v24, %v2078_v26 }
 0x4ff   :  { %v1782_v27 = vpop.f32.mrf.mxu1 }
 0x500   :  { %v1007_v28 = vsel %vm171_vm3, %v1001_v25, -inf }
 0x501   :  { %1008 = vmax.xlane.f32.xlu0 %v1007_v28 }
 0x517   :  { %1273 = vrot.lane.b32.xlu0 %v2048_v13, %s1980_s16 }
 0x51b   :  { %1271 = vrot.lane.b32.xlu0 %v2048_v13, %s1981_s17 }
 0x52e   :  { %v2173_v29 = vpop.f32.mrf.mxu0 }
 0x530   :  { %v1787_v30 = vpop.f32.mrf.mxu0 }
 0x531   :  { %v1539_v30 = vld [vmem:[#allocation9 + $0x18] sm:$0xff] }
 0x532   :  { %v1266_v31 = vpop.f32.mrf.mxu0 }
 0x533   :  { %v1267_v32 = vadd.f32 %v1266_v31, %v2078_v26  ;;  %v1538_v31 = vld [vmem:[#allocation9 + $0x10] sm:$0xff] }
 0x534   :  { %v1797_v33 = vpop.f32.mrf.mxu0 }
 0x535   :  { %v1349_v34 = vsel %vm171_vm3, %v1267_v32, -inf }
 0x536   :  { %1350 = vmax.xlane.f32.xlu1 %v1349_v34 }
 0x547   :  { %1443 = vrot.lane.b32.xlu1 %v2048_v13, %s1982_s18 }
 0x56b   :  { %672 = vadd.xlane.f32.xlu1 %v671_v35 }
 0x58a   :  { %v1009_v36 = vpop.xlane.xlu0 %1008 }
 0x58b   :  { %v1011_v37 = vsub.f32 %v1001_v25, %v1009_v36 }
 0x58d   :  { %v1014_v38 = vmul.f32 1.442695, %v1011_v37 }
 0x58e   :  { %v1274_v39 = vpop.permute.xlu0 %1273 }
 0x58f   :  { %1856 = vpow2.f32 %v1014_v38 }
 0x592   :  { %v1272_v13 = vpop.permute.xlu0 %1271 }
 0x59c   :  { %v1857_v40 = vpop.eup %1856 }
 0x59d   :  { %1791 = vmatmul.mubr.msk.f32.vlgmr.msra.gmra.mxu1 %vm171_vm3, %v1857_v40  ;;  %v1019_v41 = vsel %vm171_vm3, %v1857_v40, 0.0 }
 0x59e   :  { %1799 = vmatpush3.xpose.msk.msra.mxu1 %vm171_vm3, %v1274_v39  ;;  %1020 = vadd.xlane.f32.xlu1 %v1019_v41  ;;  %v1675_v41 = vld [vmem:[%s2229_s4] ss:$0 sm:$0xff] }
 0x59f   :  { %1800 = vmatprep.mubr.msk.f32.mxu1 %vm1970_vm2, %v1969_v6  ;;  %1808 = vmatprep.subr.mxu1 %v1969_v6 }
 0x5a1   :  { %1801 = vmatmul.mubr.msk.f32.vlgmr.msra.gmra.mxu1 %vm171_vm3, %v1272_v13 }
 0x5a2   :  { %1810 = vmatprep.mubr.msk.f32.mxu1 %vm1970_vm2, %v1969_v6  ;;  %v674_v6 = vsel %vm171_vm3, %v2145_v14, 0.0 }
 0x5bf   :  { %v1351_v42 = vpop.xlane.xlu1 %1350 }
 0x5c0   :  { %v1355_v52 = vsub.f32 %v1267_v32, %v1351_v42  ;;  %v1536_v32 = vld [vmem:[#allocation9] sm:$0xff] }
 0x5c2   :  { %v1357_v53 = vmul.f32 1.442695, %v1355_v52 }
 0x5c3   :  { %v1444_v43 = vpop.permute.xlu1 %1443 }
 0x5c4   :  { %1809 = vmatpush3.msra.mxu1 %v1444_v43  ;;  %1858 = vpow2.f32 %v1357_v53 }
 0x5d1   :  { %v1859_v56 = vpop.eup %1858 }
 0x5d2   :  { %v1361_v58 = vsel %vm171_vm3, %v1859_v56, 0.0 }
 0x5f4   :  { %v673_v59 = vpop.xlane.xlu1 %672 }
 0x5f5   :  { %1860 = vrcp.f32 %v673_v59 }
 0x602   :  { %v1861_v60 = vpop.eup %1860 }
 0x603   :  { %v831_v61 = vmul.f32 %v1861_v60, %v2135_v63  ;;  %v338_v63 = vsel %vm171_vm3, %v2101_v47, 0.0 }
 0x65d   :  { %v1170_v44 = vpop.f32.mrf.mxu1 }
 0x65f   :  { %v1792_v46 = vpop.f32.mrf.mxu1 }
 0x661   :  { %v1345_v48 = vpop.f32.mrf.mxu1 }
 0x662   :  { %v1346_v49 = vadd.f32 %v1345_v48, %v2078_v26  ;;  %v335_v26 = vsel %vm171_vm3, %v2094_v45, 0.0 }
 0x663   :  { %v1802_v50 = vpop.f32.mrf.mxu1 }
 0x664   :  { %v1352_v51 = vsel %vm171_vm3, %v1346_v49, -inf }
 0x665   :  { %1353 = vmax.xlane.f32.xlu0 %v1352_v51 }
 0x67b   :  { %1367 = vrot.lane.b32.xlu0 %v2045_v12, %s1982_s18  ;;  %v1021_v12 = vpop.xlane.xlu1 %1020 }
 0x67c   :  { %1862 = vrcp.f32 %v1021_v12 }
 0x689   :  { %v1863_v62 = vpop.eup %1862 }
 0x68a   :  { %v1177_v0 = vmul.f32 %v1863_v62, %v1170_v44 }
 0x69a   :  { %675 = vadd.xlane.f32.xlu0 %v674_v6 }
 0x69e   :  { %1017 = vadd.xlane.f32.xlu0 %v1016_v54 }
 0x6a2   :  { %1362 = vadd.xlane.f32.xlu0 %v1361_v58 }
 0x6a6   :  { %336 = vadd.xlane.f32.xlu0 %v335_v26 }
 0x6bc   :  { %835 = vrot.lane.b32.xlu0 %v831_v61, %s1967_s24 }
 0x6c0   :  { %1182 = vrot.lane.b32.xlu0 %v1177_v0, %s1983_s19 }
 0x6ee   :  { %v1354_v1 = vpop.xlane.xlu0 %1353 }
 0x6ef   :  { %v1356_v2 = vsub.f32 %v1346_v49, %v1354_v1 }
 0x6f1   :  { %v1359_v3 = vmul.f32 1.442695, %v1356_v2 }
 0x6f2   :  { %v1368_v4 = vpop.permute.xlu0 %1367 }
 0x6f3   :  { %1864 = vpow2.f32 %v1359_v3  ;;  %1804 = vmatpush3.msra.mxu0 %v1368_v4 }
 0x6f4   :  { %1806 = vmatmul.mubr.msk.f32.vlgmr.msra.gmra.mxu0 %vm171_vm3, %v1859_v56  ;;  %1813 = vmatprep.subr.mxu0 %v1539_v30 }
 0x6f5   :  { %1814 = vmatpush3.msra.mxu0 %v1539_v30 }
 0x6f6   :  { %1815 = vmatprep.subr.mxu0 %v1538_v31 }
 0x6f7   :  { %1816 = vmatpush3.msra.mxu0 %v1538_v31 }
 0x700   :  { %v1865_v45 = vpop.eup %1864 }
 0x701   :  { %1811 = vmatmul.mubr.msk.f32.vlgmr.msra.gmra.mxu1 %vm171_vm3, %v1865_v45  ;;  %v1364_v5 = vsel %vm171_vm3, %v1865_v45, 0.0 }
 0x702   :  { %1365 = vadd.xlane.f32.xlu1 %v1364_v5 }
 0x706   :  { %339 = vadd.xlane.f32.xlu1 %v338_v63 }
 0x723   :  { %v676_v7 = vpop.xlane.xlu0 %675 }
 0x724   :  { %1866 = vrcp.f32 %v676_v7 }
 0x727   :  { %v1018_v8 = vpop.xlane.xlu0 %1017 }
 0x728   :  { %1868 = vrcp.f32 %v1018_v8 }
 0x72b   :  { %v1363_v9 = vpop.xlane.xlu0 %1362 }
 0x72f   :  { %v337_v10 = vpop.xlane.xlu0 %336 }
 0x730   :  { %1870 = vrcp.f32 %v337_v10 }
 0x731   :  { %v1867_v11 = vpop.eup %1866 }
 0x732   :  { %v832_v14 = vmul.f32 %v1867_v11, %v2165_v22 }
 0x733   :  { %v836_v18 = vpop.permute.xlu0 %835 }
 0x734   :  { %837 = vrot.lane.b32.xlu1 %v832_v14, %s1967_s24 }
 0x735   :  { %v1869_v15 = vpop.eup %1868 }
 0x736   :  { %v1176_v16 = vmul.f32 %v1869_v15, %v2173_v29 }
 0x737   :  { %v1183_v24 = vpop.permute.xlu0 %1182 }
 0x738   :  { %1180 = vrot.lane.b32.xlu1 %v1176_v16, %s1983_s19 }
 0x73d   :  { %v1871_v17 = vpop.eup %1870 }
 0x73e   :  { %v495_v47 = vmul.f32 %v1871_v17, %v2124_v55 }
 0x740   :  { %497 = vst.msk [vmem:[#allocation3] sm:$0xff] %vm171_vm3, %v495_v47 }
 0x741   :  { %842 = vst.msk [vmem:[#allocation3] sm:$0xff] %vm841_vm5, %v836_v18 }
 0x78b   :  { %v1366_v19 = vpop.xlane.xlu1 %1365 }
 0x78f   :  { %v340_v20 = vpop.xlane.xlu1 %339 }
 0x790   :  { %1872 = vrcp.f32 %v340_v20 }
 0x791   :  { %1874 = vrcp.f32 %v1363_v9 }
 0x792   :  { %1876 = vrcp.f32 %v1366_v19 }
 0x79d   :  { %v1873_v21 = vpop.eup %1872 }
 0x79e   :  { %v496_v22 = vmul.f32 %v1873_v21, %v2126_v57  ;;  %v1875_v25 = vpop.eup %1874  ;;  %v1537_v57 = vld [vmem:[#allocation9 + $0x8] sm:$0xff] }
 0x79f   :  { %1817 = vmatprep.subr.mxu0 %v1537_v57  ;;  %v1877_v33 = vpop.eup %1876 }
 0x7a0   :  { %498 = vst.msk [vmem:[#allocation3 + $0x8] sm:$0xff] %vm171_vm3, %v496_v22  ;;  %1818 = vmatpush3.msra.mxu0 %v1537_v57 }
 0x7a1   :  { %1819 = vmatprep.subr.mxu0 %v1536_v32 }
 0x7a2   :  { %1820 = vmatpush3.msra.mxu0 %v1536_v32 }
 0x7a6   :  { %v838_v23 = vpop.permute.xlu1 %837 }
 0x7a7   :  { %843 = vst.msk [vmem:[#allocation3 + $0x8] sm:$0xff] %vm841_vm5, %v838_v23 }
 0x7a8   :  { %1188 = vst.msk [vmem:[#allocation3 + $0x8] sm:$0xff] %vm1186_vm6, %v1183_v24 }
 0x7aa   :  { %v1181_v55 = vpop.permute.xlu1 %1180 }
 0x7ab   :  { %1187 = vst.msk [vmem:[#allocation3] sm:$0xff] %vm1186_vm6, %v1181_v55 }
 0x7b4   :  { %v1439_v27 = vpop.f32.mrf.mxu0 }
 0x7b5   :  { %v1521_v28 = vmul.f32 %v1875_v25, %v1439_v27 }
 0x7b6   :  { %v1807_v29 = vpop.f32.mrf.mxu0 }
 0x7b7   :  { %1525 = vrot.lane.b32.xlu1 %v1521_v28, %s1984_s20 }
 0x7c1   :  { %v1515_v34 = vpop.f32.mrf.mxu1 }
 0x7c2   :  { %v1522_v35 = vmul.f32 %v1877_v33, %v1515_v34 }
 0x7c3   :  { %v1812_v36 = vpop.f32.mrf.mxu1 }
 0x7c4   :  { %1527 = vrot.lane.b32.xlu0 %v1522_v35, %s1984_s20 }
 0x829   :  { %v1526_v37 = vpop.permute.xlu1 %1525 }
 0x82a   :  { %1532 = vst.msk [vmem:[#allocation3] sm:$0xff] %vm1531_vm7, %v1526_v37 }
 0x831   :  { %v1534_v38 = vld [vmem:[#allocation3] sm:$0xff] }
 0x832   :  { %1821 = vmatprep.mubr.msk.f32.mxu0 %vm75_vm0, %v1534_v38 }
 0x836   :  { %v1528_v39 = vpop.permute.xlu0 %1527 }
 0x837   :  { %1533 = vst.msk [vmem:[#allocation3 + $0x8] sm:$0xff] %vm1531_vm7, %v1528_v39 }
 0x83e   :  { %v1535_v40 = vld [vmem:[#allocation3 + $0x8] sm:$0xff] }
 0x83f   :  { %1822 = vmatmul.mubr.msk.f32.vlgmr.msra.gmra.mxu0 %vm75_vm0, %v1535_v40 }
 0x8ff   :  { %v1823_v13 = vpop.f32.mrf.mxu0 }
 0x900   :  { %v1625_v42 = vadd.f32 %v1823_v13, %v1675_v41 }
 0x901   :  { %v1619_v43 = vpop.f32.mrf.mxu0 }
 0x902   :  { %1629 = vst.msk [vmem:[#allocation10 + $0x8] sm:$0xff] %vm75_vm0, %v1625_v42  ;;  %v1620_v44 = vadd.f32 %v1675_v41, %v1619_v43 }
 0x904   :  { %1628 = vst.msk [vmem:[#allocation10] sm:$0xff] %vm75_vm0, %v1620_v44 }
 0x905   :  { %1949 = shalt.err (!%p1946_p5)
}
 0x906   :  { %1641 = dma.vmem_to_hbm [thread:$0]  %s1636_s26, 256, %s2230_s5, [#allocation6], %s1966_s23, %s1966_s23, %s1967_s24  }
 0x907   :  { %1962 = dma.done.wait [#allocation6], 256  }
 0x908   :  { %1963 = vsyncadd [#allocation6], 4294967040 }
 0x909   :  { %1645 = vsyncpa [#allocation5], 1 }
 0x90a   :  { %1646 = vsyncpa [#allocation8], 1 }
 0x90b   :  { %1647 = vsyncpa [#allocation6], 1 }

</bundles_post_ra>
